<compile_context>
chip_gen: v7x
topology: tpu7x:2x2x1
jax: 0.10.0
libtpu: 0.0.40
codegen_flags: <defaults>
</compile_context>

<pallas_src>
import functools

import jax
import jax.numpy as jnp
from jax.experimental import pallas as pl
from jax.experimental.pallas import tpu as pltpu


# ------------------------------ helpers --------------------------------------

def _round_up(v, m):
    return ((v + m - 1) // m) * m


def _vmem_capacity_bytes():
    try:
        return int(pltpu.get_tpu_info().vmem_capacity_bytes)
    except Exception:
        return 64 * 1024 * 1024            # conservative: v7x per-TensorCore


def _vmem_limit_bytes():
    # Leave headroom for compiler scratch / auto double-buffers:
    # ~48 MiB on v7x (64 MiB physical), up to 96 MiB on v5e/v6e (128 MiB).
    return int(min(_vmem_capacity_bytes() - 16 * 2**20, 96 * 2**20))


def _pick_tm(n):
    """Row tile: multiple of 16 (bf16 sublane packing); keep one [tm, N] f32
    score tile near ~4 MiB on v7x (64 MiB VMEM) / ~8 MiB on v5e/v6e."""
    cap_bytes = (8 if _vmem_capacity_bytes() > 80 * 2**20 else 4) * 2**20
    cap = max(16, cap_bytes // max(4 * n, 1))
    cap = min(cap, _round_up(n, 16))
    for cand in (512, 256, 128, 64, 32, 16):
        if cand <= cap:
            return cand
    return 16


def _build_amat(a_src, a_dst, heads, f_out):
    """Block-diagonal [H*F_out, 2H]: col hd -> a_dst[hd], col H+hd -> a_src[hd]."""
    hf = heads * f_out
    amat = jnp.zeros((hf, 2 * heads), jnp.float32)
    for hd in range(heads):
        amat = amat.at[hd * f_out:(hd + 1) * f_out, hd].set(a_dst[hd])
        amat = amat.at[hd * f_out:(hd + 1) * f_out, heads + hd].set(a_src[hd])
    return amat


# ----------------------------- Pallas kernels --------------------------------

def gat_project_kernel(x_ref, w_ref, amat_ref, h_ref, alpha_ref):
    """One row tile: h = x @ W (bf16 in, f32 acc) and all per-head attention
    scores via one MXU matmul against the block-diagonal score matrix."""
    xb = x_ref[...].astype(jnp.bfloat16)
    wb = w_ref[...].astype(jnp.bfloat16)
    h = jnp.dot(xb, wb, preferred_element_type=jnp.float32)          # [TM, H*F]
    hb = h.astype(jnp.bfloat16)
    ab = amat_ref[...].astype(jnp.bfloat16)
    alpha = jnp.dot(hb, ab, preferred_element_type=jnp.float32)      # [TM, 2H]
    h_ref[...] = hb
    alpha_ref[...] = alpha


def gat_attn_kernel(adst_ref, asrc_ref, h_ref, mask_ref, bias_ref, out_ref, *,
                    heads, f_out, concat, apply_elu):
    """One TM-row tile of targets: masked softmax over all sources + aggregation.
    Normalization is applied AFTER the aggregation matmul (TM*F_out scale instead
    of a TM*N multiply)."""
    mask = mask_ref[...].astype(jnp.float32)          # bf16 stream -> f32 once
    tm, out_pad = out_ref.shape
    real_dim = heads * f_out if concat else f_out

    pieces = []
    agg = None
    for hd in range(heads):                           # heads is small & static
        dst = adst_ref[:, hd:hd + 1]                  # [TM, 1]
        src = asrc_ref[hd:hd + 1, :]                  # [1, N]
        e = dst + src                                 # [TM, N]
        e = jnp.maximum(e, 0.2 * e)                   # LeakyReLU(0.2): mult+max
        e = e + mask                                  # additive mask (hoisted)
        e = e - jnp.max(e, axis=1, keepdims=True)
        p = jnp.exp(e)                                # masked entries underflow to 0
        denom = jnp.sum(p, axis=1, keepdims=True)     # self-loops guarantee > 0
        hh = h_ref[:, hd * f_out:(hd + 1) * f_out]    # [N, F_out] bf16
        o = jnp.dot(p.astype(jnp.bfloat16), hh,
                    preferred_element_type=jnp.float32)   # [TM, F_out]
        o = o * pl.reciprocal(denom, approx=True)     # normalize after matmul (EUP)
        if concat:
            pieces.append(o)
        else:
            agg = o if agg is None else agg + o

    if concat:
        out = jnp.concatenate(pieces, axis=1) + bias_ref[:, :real_dim]
    else:
        out = agg * (1.0 / heads) + bias_ref[:, :f_out]
    if apply_elu:
        out = jnp.where(out > 0, out, jnp.exp(out) - 1.0)
    if out_pad > real_dim:                            # zero lane padding ...
        out = jnp.concatenate(
            [out, jnp.zeros((tm, out_pad - real_dim), out.dtype)], axis=1)
    out_ref[...] = out.astype(out_ref.dtype)          # ... one lane-dense store


# ------------------------------ layer wrapper ---------------------------------

def gat_conv_layer(x, w, a_src, a_dst, bias, mask_bf, *, heads, f_out,
                   concat, apply_elu, tm, out_dtype):
    np_pad = x.shape[0]
    hf = heads * f_out
    # Accept lane-padded activations from the previous layer: zero rows in W
    # make the padded (zero) input columns contribute nothing.
    if x.shape[1] > w.shape[0]:
        w = jnp.concatenate(
            [w, jnp.zeros((x.shape[1] - w.shape[0], w.shape[1]), w.dtype)], axis=0)
    amat = _build_amat(a_src, a_dst, heads, f_out)

    vmem_limit = _vmem_limit_bytes()
    grid = (np_pad // tm,)

    # ---- projection: row-tiled, W / amat resident -----------------------------
    h_bf, alpha = pl.pallas_call(
        gat_project_kernel,
        out_shape=(jax.ShapeDtypeStruct((np_pad, hf), jnp.bfloat16),
                   jax.ShapeDtypeStruct((np_pad, 2 * heads), jnp.float32)),
        grid=grid,
        in_specs=[
            pl.BlockSpec((tm, x.shape[1]), lambda i: (i, 0)),       # x rows
            pl.BlockSpec((w.shape[0], hf), lambda i: (0, 0)),       # W resident
            pl.BlockSpec((hf, 2 * heads), lambda i: (0, 0)),        # amat resident
        ],
        out_specs=(pl.BlockSpec((tm, hf), lambda i: (i, 0)),
                   pl.BlockSpec((tm, 2 * heads), lambda i: (i, 0))),
        compiler_params=pltpu.CompilerParams(
            dimension_semantics=("parallel",),
            vmem_limit_bytes=vmem_limit),
    )(x, w, amat)

    adst = alpha[:, :heads]                      # [N, H]  (tiny XLA slice)
    asrc_t = jnp.transpose(alpha[:, heads:])     # [H, N]  (tiny XLA transpose)

    out_dim = hf if concat else f_out
    out_pad = _round_up(out_dim, 128)            # lane-dense HBM stores
    bias_pad = jnp.zeros((1, out_pad), jnp.float32).at[:, :out_dim].set(bias)

    # ---- attention: only the O(N^2) bf16 mask streams; h/scores resident -----
    out = pl.pallas_call(
        functools.partial(gat_attn_kernel, heads=heads, f_out=f_out,
                          concat=concat, apply_elu=apply_elu),
        out_shape=jax.ShapeDtypeStruct((np_pad, out_pad), out_dtype),
        grid=grid,
        in_specs=[
            pl.BlockSpec((tm, heads), lambda i: (i, 0)),       # dst scores (tiled)
            pl.BlockSpec((heads, np_pad), lambda i: (0, 0)),   # src scores (resident)
            pl.BlockSpec((np_pad, hf), lambda i: (0, 0)),      # h, bf16   (resident)
            pl.BlockSpec((tm, np_pad), lambda i: (i, 0)),      # adjacency bias (bf16 stream)
            pl.BlockSpec((1, out_pad), lambda i: (0, 0)),      # bias      (resident)
        ],
        out_specs=pl.BlockSpec((tm, out_pad), lambda i: (i, 0)),
        compiler_params=pltpu.CompilerParams(
            dimension_semantics=("parallel",),
            vmem_limit_bytes=vmem_limit),
    )(adst, asrc_t, h_bf, mask_bf, bias_pad)
    return out            # [Np, out_pad]; real data is [:N, :out_dim]


# ----------------------------- references ------------------------------------

def gat_conv_ref(x, w, a_src, a_dst, bias, adj, *, heads, f_out, concat,
                 apply_elu):
    """Faithful float32 reference of the torch-geometric GATConv math."""
    h = x @ w
    outs = []
    for hd in range(heads):
        hh = h[:, hd * f_out:(hd + 1) * f_out]
        src = jnp.sum(hh * a_src[hd], axis=1)
        dst = jnp.sum(hh * a_dst[hd], axis=1)
        e = dst[:, None] + src[None, :]
        e = jnp.where(e > 0, e, 0.2 * e)
        e = jnp.where(adj > 0, e, -1e9)
        e = e - jnp.max(e, axis=1, keepdims=True)
        p = jnp.where(adj > 0, jnp.exp(e), 0.0)
        attn = p / jnp.sum(p, axis=1, keepdims=True)
        outs.append(attn @ hh)
    out = jnp.concatenate(outs, axis=1) if concat else sum(outs) / heads
    out = out + bias
    if apply_elu:
        out = jnp.where(out > 0, out, jnp.exp(out) - 1.0)
    return out


def gat_conv_matched(x, w, a_src, a_dst, bias, mask_bias, *, heads, f_out,
                     concat, apply_elu, out_dtype):
    """Plain-JAX reference mirroring the kernel's precision choices
    (bf16 MXU operands, bf16 additive mask, normalize-after-matmul,
    bf16 inter-layer activations)."""
    bf = jnp.bfloat16
    amat = _build_amat(a_src, a_dst, heads, f_out)
    mask = mask_bias.astype(bf).astype(jnp.float32)
    h = jnp.dot(x.astype(bf), w.astype(bf),
                preferred_element_type=jnp.float32).astype(bf)
    alphas = jnp.dot(h, amat.astype(bf), preferred_element_type=jnp.float32)
    outs = []
    for hd in range(heads):
        dst = alphas[:, hd:hd + 1]
        src = alphas[:, heads + hd][None, :]
        e = dst + src
        e = jnp.maximum(e, 0.2 * e) + mask
        e = e - jnp.max(e, axis=1, keepdims=True)
        p = jnp.exp(e)
        denom = jnp.sum(p, axis=1, keepdims=True)
        hh = h[:, hd * f_out:(hd + 1) * f_out]
        o = jnp.dot(p.astype(bf), hh, preferred_element_type=jnp.float32) / denom
        outs.append(o)
    out = jnp.concatenate(outs, axis=1) if concat else sum(outs) / heads
    out = out + bias
    if apply_elu:
        out = jnp.where(out > 0, out, jnp.exp(out) - 1.0)
    return out.astype(out_dtype)


# ------------------------------ GAT model ------------------------------------

def init_gat_params(key, in_channels, num_classes, num_hidden, attention_head,
                    num_layers):
    """Mirrors GAT.__init__ layer construction; deterministic init."""
    feature_list = [in_channels, num_hidden, num_classes]
    for _ in range(num_layers - 2):
        feature_list.insert(-1, num_hidden)
    heads = [1] + list(attention_head)

    params = []
    for i in range(len(feature_list) - 1):
        concat = False if i == num_layers - 1 else True
        f_in = feature_list[i] * heads[i]
        f_out = feature_list[i + 1]
        h = heads[i + 1]
        key, k1, k2, k3 = jax.random.split(key, 4)
        scale = 1.0 / jnp.sqrt(jnp.float32(f_in))
        w = jax.random.normal(k1, (f_in, h * f_out), jnp.float32) * scale
        a_src = jax.random.normal(k2, (h, f_out), jnp.float32) * 0.1
        a_dst = jax.random.normal(k3, (h, f_out), jnp.float32) * 0.1
        out_dim = h * f_out if concat else f_out
        bias = jnp.zeros((1, out_dim), jnp.float32)
        params.append(dict(w=w, a_src=a_src, a_dst=a_dst, bias=bias,
                           heads=h, f_out=f_out, concat=concat))
    return params


def gat_forward(x, adj, params, *, mode="kernel", tm=None):
    n = x.shape[0]
    n_layers = len(params)
    last = params[-1]
    final_dim = last["heads"] * last["f_out"] if last["concat"] else last["f_out"]

    if mode == "kernel":
        if tm is None:
            tm = _pick_tm(n)
        np_pad = _round_up(max(n, tm), tm)
        # Additive adjacency mask built once, padded and shared by every layer.
        # Padded source columns get -1e9; padded rows get an inert self-loop.
        mask = jnp.full((np_pad, np_pad), jnp.float32(-1e9))
        mask = mask.at[:n, :n].set(
            jnp.where(adj > 0, jnp.float32(0.0), jnp.float32(-1e9)))
        if np_pad > n:
            pad_idx = jnp.arange(n, np_pad)
            mask = mask.at[pad_idx, pad_idx].set(0.0)
        mask_bf = mask.astype(jnp.bfloat16)          # halved HBM stream

        xk = jnp.zeros((np_pad, x.shape[1]), x.dtype).at[:n].set(x)
        for i, p in enumerate(params):
            apply_elu = i < n_layers - 1             # F.elu between layers only
            out_dtype = jnp.bfloat16 if apply_elu else jnp.float32
            xk = gat_conv_layer(xk, p["w"], p["a_src"], p["a_dst"], p["bias"],
                                mask_bf, heads=p["heads"], f_out=p["f_out"],
                                concat=p["concat"], apply_elu=apply_elu,
                                tm=tm, out_dtype=out_dtype)
        return xk[:n, :final_dim]                    # strip row + lane padding

    if mode == "matched":
        mask_bias = jnp.where(adj > 0, jnp.float32(0.0), jnp.float32(-1e9))
        for i, p in enumerate(params):
            apply_elu = i < n_layers - 1
            out_dtype = jnp.bfloat16 if apply_elu else jnp.float32
            x = gat_conv_matched(x, p["w"], p["a_src"], p["a_dst"], p["bias"],
                                 mask_bias, heads=p["heads"], f_out=p["f_out"],
                                 concat=p["concat"], apply_elu=apply_elu,
                                 out_dtype=out_dtype)
        return x

    for i, p in enumerate(params):
        apply_elu = i < n_layers - 1
        x = gat_conv_ref(x, p["w"], p["a_src"], p["a_dst"], p["bias"], adj,
                         heads=p["heads"], f_out=p["f_out"],
                         concat=p["concat"], apply_elu=apply_elu)
    return x


# ---------------------------------- main --------------------------------------

if __name__ == "__main__":
    key = jax.random.PRNGKey(0)

    # Small problem: 60 nodes (padded to 64 in-kernel), 8 input features,
    # hidden 16, 4 classes, 2 layers, attention heads [2, 2].
    # Dropout is identity in eval mode.
    N, IN_C, HID, CLS = 60, 8, 16, 4
    NUM_LAYERS = 2
    ATTN_HEADS = [2, 2]

    key, kx, ke = jax.random.split(key, 3)
    x = jax.random.normal(kx, (N, IN_C), jnp.float32)

    # Deterministic random edge set (dense adjacency mask) + self-loops.
    adj = (jax.random.uniform(ke, (N, N)) < 0.25).astype(jnp.float32)
    adj = jnp.maximum(adj, jnp.eye(N, dtype=jnp.float32))   # add_self_loops=True

    params = init_gat_params(key, IN_C, CLS, HID, ATTN_HEADS, NUM_LAYERS)

    # tm=16 -> N padded to 64, grid=(4,) so the row-tiled pipeline (and the
    # N-padding path) are actually exercised.
    out = gat_forward(x, adj, params, mode="kernel", tm=16)
    out = jax.block_until_ready(out)
    assert out.shape == (N, CLS), out.shape

    matched = gat_forward(x, adj, params, mode="matched")   # same precision choices
    ref = gat_forward(x, adj, params, mode="ref")           # faithful float32
    err_m = float(jnp.max(jnp.abs(out - matched)))
    err_r = float(jnp.max(jnp.abs(out - ref)))
    assert jnp.allclose(out, matched, atol=2e-2, rtol=2e-2), err_m
    assert jnp.allclose(out, ref, atol=1e-1, rtol=1e-1), err_r

    print("KERNEL_OK")
</pallas_src>

<mosaic_0001>
module attributes {stable_mosaic.version = 11 : i64} {
  func.func @gat_project_kernel(%arg0: i32, %arg1: memref<16x8xf32, #tpu.memory_space<vmem>>, %arg2: memref<8x32xf32, #tpu.memory_space<vmem>>, %arg3: memref<32x4xf32, #tpu.memory_space<vmem>>, %arg4: memref<16x32xbf16, #tpu.memory_space<vmem>>, %arg5: memref<16x4xf32, #tpu.memory_space<vmem>>) attributes {dimension_semantics = [#tpu.dimension_semantics<parallel>], iteration_bounds = array<i64: 4>, scalar_prefetch = 0 : i64, scratch_operands = 0 : i64, tpu.core_type = #tpu.core_type<tc>, window_params = [{transform_indices = @transform_0, window_bounds = array<i64: 16, 8>}, {pipeline_mode = #tpu.pipeline_mode<synchronous>, transform_indices = @transform_1, window_bounds = array<i64: 8, 32>}, {pipeline_mode = #tpu.pipeline_mode<synchronous>, transform_indices = @transform_2, window_bounds = array<i64: 32, 4>}, {transform_indices = @transform_3, window_bounds = array<i64: 16, 32>}, {transform_indices = @transform_4, window_bounds = array<i64: 16, 4>}]} {
    %c0 = arith.constant 0 : index
    %c0_0 = arith.constant 0 : index
    %0 = vector.load %arg1[%c0, %c0_0] : memref<16x8xf32, #tpu.memory_space<vmem>>, vector<16x8xf32>
    %1 = arith.truncf %0 : vector<16x8xf32> to vector<16x8xbf16>
    %c0_1 = arith.constant 0 : index
    %c0_2 = arith.constant 0 : index
    %2 = vector.load %arg2[%c0_1, %c0_2] : memref<8x32xf32, #tpu.memory_space<vmem>>, vector<8x32xf32>
    %3 = arith.truncf %2 : vector<8x32xf32> to vector<8x32xbf16>
    %cst = arith.constant dense<0.000000e+00> : vector<16x32xf32>
    %4 = tpu.matmul %1, %3, %cst {dimension_numbers = #tpu.dot_dimension_numbers<[1], [0], [0], [1], [0, 0, 1, 1], [], []>} : vector<16x8xbf16>, vector<8x32xbf16>, vector<16x32xf32> -> vector<16x32xf32>
    %5 = arith.truncf %4 : vector<16x32xf32> to vector<16x32xbf16>
    %c0_3 = arith.constant 0 : index
    %c0_4 = arith.constant 0 : index
    %6 = vector.load %arg3[%c0_3, %c0_4] : memref<32x4xf32, #tpu.memory_space<vmem>>, vector<32x4xf32>
    %7 = arith.truncf %6 : vector<32x4xf32> to vector<32x4xbf16>
    %cst_5 = arith.constant dense<0.000000e+00> : vector<16x4xf32>
    %8 = tpu.matmul %5, %7, %cst_5 {dimension_numbers = #tpu.dot_dimension_numbers<[1], [0], [0], [1], [0, 0, 1, 1], [], []>} : vector<16x32xbf16>, vector<32x4xbf16>, vector<16x4xf32> -> vector<16x4xf32>
    %c0_6 = arith.constant 0 : index
    %c0_7 = arith.constant 0 : index
    %9 = vector.load %arg4[%c0_6, %c0_7] : memref<16x32xbf16, #tpu.memory_space<vmem>>, vector<16x32xbf16>
    tpu.vector_store %arg4[%c0_6, %c0_7], %5 {strides = array<i32>} : memref<16x32xbf16, #tpu.memory_space<vmem>>, vector<16x32xbf16>,
    %c0_8 = arith.constant 0 : index
    %c0_9 = arith.constant 0 : index
    %10 = vector.load %arg5[%c0_8, %c0_9] : memref<16x4xf32, #tpu.memory_space<vmem>>, vector<16x4xf32>
    tpu.vector_store %arg5[%c0_8, %c0_9], %8 {strides = array<i32>} : memref<16x4xf32, #tpu.memory_space<vmem>>, vector<16x4xf32>,
    return
  }
  func.func @transform_0(%arg0: i32) -> (i32, i32) {
    %c0_i32 = arith.constant 0 : i32
    %c0_i32_0 = arith.constant 0 : i32
    return %arg0, %c0_i32 : i32, i32
  }
  func.func @transform_1(%arg0: i32) -> (i32, i32) {
    %c0_i32 = arith.constant 0 : i32
    %c0_i32_0 = arith.constant 0 : i32
    %c0_i32_1 = arith.constant 0 : i32
    return %c0_i32, %c0_i32_0 : i32, i32
  }
  func.func @transform_2(%arg0: i32) -> (i32, i32) {
    %c0_i32 = arith.constant 0 : i32
    %c0_i32_0 = arith.constant 0 : i32
    %c0_i32_1 = arith.constant 0 : i32
    return %c0_i32, %c0_i32_0 : i32, i32
  }
  func.func @transform_3(%arg0: i32) -> (i32, i32) {
    %c0_i32 = arith.constant 0 : i32
    %c0_i32_0 = arith.constant 0 : i32
    return %arg0, %c0_i32 : i32, i32
  }
  func.func @transform_4(%arg0: i32) -> (i32, i32) {
    %c0_i32 = arith.constant 0 : i32
    %c0_i32_0 = arith.constant 0 : i32
    return %arg0, %c0_i32 : i32, i32
  }
}

</mosaic_0001>

<bundles_post_ra>
// kernel: tpu_custom_call.1
= control target key start
LH: loop header
LB: loop body
LE: loop exit
PB: predicated region body
PF: predicated region fallthrough
CT: control target
= control target key end

     0   :  { %s508_s15 = smov 0   ;;  %s547_s0 = inlined_call_operand.vmem [shape: f32[64,8], index: 0, kind: input, shape index: {}]   ;;  %s548_s1 = inlined_call_operand.vmem [shape: f32[8,32], index: 1, kind: input, shape index: {}]   ;;  %s549_s2 = inlined_call_operand.vmem [shape: f32[32,4], index: 2, kind: input, shape index: {}]   ;;  %s550_s3 = inlined_call_operand.vmem [shape: bf16[64,32], index: 3, kind: output, shape index: {0}]   ;;  %s551_s4 = inlined_call_operand.vmem [shape: f32[64,4], index: 4, kind: output, shape index: {1}]  }
   0x1 LB: > { %s425_s16 = sadd.s32 4294967295, %s479_s15   ;;  %p429_p0 = scmp.ge.s32.totalorder %s479_s15, 1  ;;  %s479_s15 = sphi %s508_s15, %s15_s15  }
   0x2   : > { %p166_p1 = scmp.lt.s32.totalorder %s479_s15, 5 }
   0x4   : > { %p167_p2 = pnand %p429_p0, %p166_p1 }
   0x5   : > { %v219_v0 = vld [vmem:[%s548_s1] sm:$0xff] (!%p167_p2)  ;;  %vm225_vm0 = vcmask (!%p167_p2), 1043456   ;;  %s430_s19 = sshll.u32 (!%p167_p2), %s425_s16, 1  ;;  %v481_v1 = vmov (!%p167_p2), 0.0   ;;  %vm482_vm1 = vmmov (!%p167_p2), 0   ;;  %v272_v4 = vld [vmem:[%s549_s2 + $0x8] sm:$0xff] (!%p167_p2) }
   0x6   : > { %170 = sbr.rel (%p167_p2) target bundleno = 450 (0x1c2), region = 32  ;;  %449 = vmatprep.subr.bf16.mxu0 (!%p167_p2), %v481_v1  ;;  %v220_v2 = vpack.c.bf16 (!%p167_p2), %v219_v0, %v219_v0  ;;  %451 = vmatprep.mubr.msk.bf16.mxu0 (!%p167_p2), %vm482_vm1, %v481_v1  ;;  %p198_p3 = scmp.lt.s32.totalorder (!%p167_p2), %s430_s19, 7  ;;  %v271_v3 = vld [vmem:[%s549_s2] sm:$0xff] (!%p167_p2)  ;;  %vm221_vm2 = vcmask (!%p167_p2), 64512   ;;  %v273_v10 = vld [vmem:[%s549_s2 + $0x10] sm:$0xff] (!%p167_p2)  ;;  %v274_v11 = vld [vmem:[%s549_s2 + $0x18] sm:$0xff] (!%p167_p2) }
   0x7   : > { %455 = vmatprep.subr.bf16.mxu1 (!%p167_p2), %v481_v1  ;;  %v275_v5 = vpack.c.bf16 (!%p167_p2), %v272_v4, %v271_v3  ;;  %459 = vmatprep.mubr.msk.bf16.mxu1 (!%p167_p2), %vm482_vm1, %v481_v1  ;;  %v276_v12 = vpack.c.bf16 (!%p167_p2), %v274_v11, %v273_v10  ;;  %vm329_vm3 = vcmask (!%p167_p2), 257024   ;;  %vm277_vm4 = vcmask (!%p167_p2), 261120  }
   0x8   : > { %v227_v6 = vsel (!%p167_p2), %vm225_vm0, %v220_v2, 0  ;;  %vm332_vm5 = vcmask (!%p167_p2), 31744  }
   0x9   : > { %450 = vmatpush3.bf16.msra.mxu0 (!%p167_p2), %v227_v6  ;;  %456 = vmatpush3.bf16.msra.mxu1 (!%p167_p2), %v275_v5 }
   0xa   : > { %457 = vmatprep.subr.bf16.mxu1 (!%p167_p2), %v481_v1 }
   0xd   : > { %s553_s19 = smov (!%p198_p3, %s430_s19), 7  ;;  %458 = vmatpush3.bf16.msra.mxu1 %v276_v12 }
   0xe   : > { %s431_s24 = sshll.u32 %s553_s19, 3  ;;  %s433_s6 = sshll.u32 %s553_s19, 2 }
   0xf   : > { %s201_s27 = scalar_lea.vmem %s547_s0, %s431_s24  ;;  %s207_s9 = scalar_lea.vmem %s550_s3, %s433_s6 }
  0x10   : > { %v216_v7 = vld [vmem:[%s201_s27] sm:$0xff]  ;;  %v217_v8 = vld [vmem:[%s201_s27 + $0x8] sm:$0xff]  ;;  %s213_s12 = scalar_lea.vmem %s551_s4, %s431_s24 }
  0x11   : > { %v218_v9 = vpack.c.bf16 %v217_v8, %v216_v7 }
  0x13   : > { %452 = vmatmul.mubr.msk.bf16.vlgmr.msra.gmra.mrb[0].mxu0 %vm221_vm2, %v218_v9 }
  0xe6   : > { %v263_v13 = vpop.f32.mrb[0].mxu0 }
  0xe7   : > { %v442_v14 = vpack.c.bf16 %v263_v13, %v263_v13  ;;  %v453_v15 = vpop.f32.mrb[1].mxu0 }
  0xe8   : > { %v266_v16 = vpop.f32.mrb[2].mxu0 }
  0xe9   : > { %330 = vst.msk [vmem:[%s207_s9] sm:$0xf] %vm329_vm3, %v442_v14  ;;  %v270_v17 = vpack.c.bf16 %v266_v16, %v263_v13  ;;  %v443_v18 = vpack.c.bf16 %v266_v16, %v266_v16  ;;  %v454_v19 = vpop.f32.mrb[3].mxu0 }
  0xeb   : > { %331 = vst.msk [vmem:[%s207_s9 + $0x4] sm:$0xf] %vm329_vm3, %v443_v18  ;;  %460 = vmatmul.mubr.msk.bf16.vlgmr.msra.gmra.mrb[0].mxu1 %vm277_vm4, %v270_v17 }
 0x1be   : > { %v315_v20 = vpop.f32.mrb[0].mxu1 }
 0x1bf   : > { %333 = vst.msk [vmem:[%s213_s12] sm:$0xff] %vm332_vm5, %v315_v20  ;;  %v461_v21 = vpop.f32.mrb[1].mxu1 }
 0x1c0   : > { %v318_v22 = vpop.f32.mrb[2].mxu1 }
 0x1c1   : > { %334 = vst.msk [vmem:[%s213_s12 + $0x8] sm:$0xff] %vm332_vm5, %v318_v22  ;;  %v462_v23 = vpop.f32.mrb[3].mxu1 }
 0x1c2 PF: > { %s15_s15 = sadd.s32 1, %s479_s15  }
 0x1c3   : > { %p12_p4 = scmp.ge.s32.totalorder %s15_s15, 6  }
 0x1c5   :  { %14 = sbr.rel (!%p12_p4) target bundleno = 1 (0x1), region = 74 }

</bundles_post_ra>
